<compile_context>
chip_gen: v6e
topology: v6e:2x2x1
jax: 0.10.0
libtpu: 0.0.40
codegen_flags: <defaults>
</compile_context>

<pallas_src>
import jax
import jax.numpy as jnp
from jax import lax
from jax.experimental import pallas as pl
from jax.experimental.pallas import tpu as pltpu

LANE = 128  # lane width: batch tiles must be multiples of this


def _round_up(n, m):
    return ((n + m - 1) // m) * m


def make_policy_kernel(tb, sub):
    """Kernel factory: tb = batch lanes per grid block, sub = lanes per inner sub-tile."""
    n_sub = tb // sub

    def policy_kernel(x_ref, w1_ref, b1_ref, w2_ref, b2_ref, w3_ref, b3_ref, o_ref):
        # Weights / biases are VMEM-resident across all grid steps (constant
        # index_map); hoist the loads out of the inner sub-tile loop.
        w1 = w1_ref[...]          # [64, 6]   fc1 weight (feature-major: [out, in])
        b1 = b1_ref[...]          # [64, 1]
        w2 = w2_ref[...]          # [32, 64]
        b2 = b2_ref[...]          # [32, 1]
        w3 = w3_ref[...]          # [32, 1]   fc3 weight as a column (output_l == 1)
        b3 = b3_ref[...]          # [1, 1]

        def body(s, carry):
            c = pl.multiple_of(s * sub, sub)
            xt = x_ref[:, pl.ds(c, sub)]                                    # [6, sub]
            # fc1 + ReLU (MXU, K=6; no K-padding — MXU is nowhere near binding here)
            h1 = jnp.dot(w1, xt, preferred_element_type=jnp.float32)       # [64, sub]
            h1 = jnp.maximum(h1 + b1, 0.0)
            # fc2 + ReLU (MXU, K=64)
            h2 = jnp.dot(w2, h1, preferred_element_type=jnp.float32)       # [32, sub]
            h2 = jnp.maximum(h2 + b2, 0.0)
            # fc3 with output_l == 1: VPU broadcast-multiply + sublane reduce
            # (uses otherwise-idle VPU/XLU slots; avoids a degenerate M=1 matmul)
            logits = jnp.sum(h2 * w3, axis=0, keepdims=True) + b3          # [1, sub]
            # softmax over the feature axis (size 1 here) with EXACT ops:
            # exp(0)=1, sum=1, 1/1=1 -> exactly 1.0, matching F.softmax on [B, 1].
            m = jnp.max(logits, axis=0, keepdims=True)
            e = jnp.exp(logits - m)
            probs = e / jnp.sum(e, axis=0, keepdims=True)
            o_ref[:, pl.ds(c, sub)] = probs                                 # lane-dense store
            return carry

        lax.fori_loop(0, n_sub, body, 0, unroll=min(4, n_sub))

    return policy_kernel


def policy_forward(x, params, *, block_rows=8192, sub_rows=256):
    """x: [B, 6] float32. Returns softmax probabilities [B, 1] (== PyTorch forward)."""
    w1, b1, w2, b2, w3, b3 = params       # weights stored [in, out], biases [1, out]
    B, f_in = x.shape
    H1 = w1.shape[1]
    H2 = w2.shape[1]
    out_l = w3.shape[1]
    # TODO(synk): the fc3 reduce + exact-1.0 softmax path assumes output_l == 1
    # (as specified by the module); widening output_l needs a lane-tiled fc3.
    assert out_l == 1, "kernel assumes output_l == 1 (module spec)"

    # Feature-major operands (features on sublanes, batch on lanes).
    w1_t = jnp.transpose(w1)              # [H1, F]
    w2_t = jnp.transpose(w2)              # [H2, H1]
    b1_c = jnp.transpose(b1)              # [H1, 1]
    b2_c = jnp.transpose(b2)              # [H2, 1]
    w3_c = w3                             # [H2, 1] already a column
    b3_c = b3                             # [1, 1]

    # Batch tiling: batch lives on the lane axis -> tiles must be multiples of 128.
    sub = _round_up(max(LANE, min(sub_rows, block_rows)), LANE)
    b_pad = _round_up(B, sub)
    tb = min(_round_up(min(block_rows, b_pad), sub), b_pad)
    # v7x megacore: ensure >= 2 grid steps whenever the batch spans >= 2 minimum tiles
    # (no-op cost on single-TC v5e/v6e).
    if b_pad // tb < 2 and b_pad >= 2 * sub:
        tb = (b_pad // 2) // sub * sub
    b_pad = _round_up(b_pad, tb)

    x_t = jnp.transpose(x)                # [F, B] lane-dense input
    if b_pad != B:
        x_t = jnp.pad(x_t, ((0, 0), (0, b_pad - B)))   # zero-pad: padded lanes are benign
    grid = (b_pad // tb,)

    out = pl.pallas_call(
        make_policy_kernel(tb, sub),
        out_shape=jax.ShapeDtypeStruct((1, b_pad), jnp.float32),
        grid=grid,
        in_specs=[
            pl.BlockSpec((f_in, tb), lambda i: (0, i)),    # x^T: streamed per batch tile
            pl.BlockSpec((H1, f_in), lambda i: (0, 0)),    # W1^T: resident
            pl.BlockSpec((H1, 1), lambda i: (0, 0)),       # b1 column: resident
            pl.BlockSpec((H2, H1), lambda i: (0, 0)),      # W2^T: resident
            pl.BlockSpec((H2, 1), lambda i: (0, 0)),       # b2 column: resident
            pl.BlockSpec((H2, 1), lambda i: (0, 0)),       # w3 column: resident
            pl.BlockSpec((1, 1), lambda i: (0, 0)),        # b3: resident
        ],
        out_specs=pl.BlockSpec((1, tb), lambda i: (0, i)), # lane-dense output block
        compiler_params=pltpu.CompilerParams(
            dimension_semantics=("parallel",),             # shard batch tiles across TCs (v7x)
            vmem_limit_bytes=32 * 1024 * 1024,             # safe on v5e/v6e/v7x; tiles are tiny
        ),
    )(x_t, w1_t, b1_c, w2_t, b2_c, w3_c, b3_c)
    return jnp.transpose(out[:, :B])      # [B, 1]


def init_params(key, input_l=6, hidden_l1=64, hidden_l2=32, output_l=1):
    """Deterministic init mimicking nn.Linear's U(-1/sqrt(fan_in), 1/sqrt(fan_in)).
    Weights stored as [in, out]; biases as [1, out]."""
    keys = jax.random.split(key, 6)

    def linear(kw, kb, fan_in, fan_out):
        bound = 1.0 / jnp.sqrt(jnp.float32(fan_in))
        w = jax.random.uniform(kw, (fan_in, fan_out), jnp.float32, -bound, bound)
        b = jax.random.uniform(kb, (1, fan_out), jnp.float32, -bound, bound)
        return w, b

    w1, b1 = linear(keys[0], keys[1], input_l, hidden_l1)
    w2, b2 = linear(keys[2], keys[3], hidden_l1, hidden_l2)
    w3, b3 = linear(keys[4], keys[5], hidden_l2, output_l)
    return (w1, b1, w2, b2, w3, b3)


def policy_forward_ref(x, params):
    """Pure-JAX reference for correctness checking."""
    w1, b1, w2, b2, w3, b3 = params
    h1 = jnp.maximum(x @ w1 + b1, 0.0)
    h2 = jnp.maximum(h1 @ w2 + b2, 0.0)
    logits = h2 @ w3 + b3
    return jax.nn.softmax(logits, axis=1)


if __name__ == "__main__":
    key = jax.random.PRNGKey(0)
    k_params, k_x1, k_x2 = jax.random.split(key, 3)

    params = init_params(k_params)

    # Small shape consistent with Policy.act(): a single env-state mini-batch.
    B, INPUT_L = 8, 6
    x = jax.random.normal(k_x1, (B, INPUT_L), dtype=jnp.float32)

    out = jax.block_until_ready(policy_forward(x, params))
    ref = policy_forward_ref(x, params)
    assert out.shape == (B, 1)
    assert jnp.allclose(out, ref, atol=1e-5, rtol=1e-5), "mismatch vs reference (B=8)"

    # Second check exercising the batch grid, inner sub-tiling, partial unroll and
    # the pad/slice path (B not a multiple of the tile).
    B2 = 520
    x2 = jax.random.normal(k_x2, (B2, INPUT_L), dtype=jnp.float32)
    out2 = jax.block_until_ready(
        policy_forward(x2, params, block_rows=256, sub_rows=128)
    )
    ref2 = policy_forward_ref(x2, params)
    assert out2.shape == (B2, 1)
    assert jnp.allclose(out2, ref2, atol=1e-5, rtol=1e-5), "mismatch vs reference (B=520)"

    # Note: softmax over a single logit (output_l=1) is identically 1.0, matching PyTorch.
    print("KERNEL_OK")
</pallas_src>

<mosaic_0001>
module attributes {stable_mosaic.version = 11 : i64} {
  func.func @policy_kernel(%arg0: i32, %arg1: memref<6x256xf32, #tpu.memory_space<vmem>>, %arg2: memref<64x6xf32, #tpu.memory_space<vmem>>, %arg3: memref<64x1xf32, #tpu.memory_space<vmem>>, %arg4: memref<32x64xf32, #tpu.memory_space<vmem>>, %arg5: memref<32x1xf32, #tpu.memory_space<vmem>>, %arg6: memref<32x1xf32, #tpu.memory_space<vmem>>, %arg7: memref<1x1xf32, #tpu.memory_space<vmem>>, %arg8: memref<1x256xf32, #tpu.memory_space<vmem>>) attributes {dimension_semantics = [#tpu.dimension_semantics<parallel>], iteration_bounds = array<i64: 1>, scalar_prefetch = 0 : i64, scratch_operands = 0 : i64, tpu.core_type = #tpu.core_type<tc>, window_params = [{transform_indices = @transform_0, window_bounds = array<i64: 6, 256>}, {pipeline_mode = #tpu.pipeline_mode<synchronous>, transform_indices = @transform_1, window_bounds = array<i64: 64, 6>}, {pipeline_mode = #tpu.pipeline_mode<synchronous>, transform_indices = @transform_2, window_bounds = array<i64: 64, 1>}, {pipeline_mode = #tpu.pipeline_mode<synchronous>, transform_indices = @transform_3, window_bounds = array<i64: 32, 64>}, {pipeline_mode = #tpu.pipeline_mode<synchronous>, transform_indices = @transform_4, window_bounds = array<i64: 32, 1>}, {pipeline_mode = #tpu.pipeline_mode<synchronous>, transform_indices = @transform_5, window_bounds = array<i64: 32, 1>}, {pipeline_mode = #tpu.pipeline_mode<synchronous>, transform_indices = @transform_6, window_bounds = array<i64: 1, 1>}, {transform_indices = @transform_7, window_bounds = array<i64: 1, 256>}]} {
    %c0 = arith.constant 0 : index
    %c0_0 = arith.constant 0 : index
    %0 = vector.load %arg2[%c0, %c0_0] : memref<64x6xf32, #tpu.memory_space<vmem>>, vector<64x6xf32>
    %c0_1 = arith.constant 0 : index
    %c0_2 = arith.constant 0 : index
    %1 = vector.load %arg3[%c0_1, %c0_2] : memref<64x1xf32, #tpu.memory_space<vmem>>, vector<64x1xf32>
    %c0_3 = arith.constant 0 : index
    %c0_4 = arith.constant 0 : index
    %2 = vector.load %arg4[%c0_3, %c0_4] : memref<32x64xf32, #tpu.memory_space<vmem>>, vector<32x64xf32>
    %c0_5 = arith.constant 0 : index
    %c0_6 = arith.constant 0 : index
    %3 = vector.load %arg5[%c0_5, %c0_6] : memref<32x1xf32, #tpu.memory_space<vmem>>, vector<32x1xf32>
    %c0_7 = arith.constant 0 : index
    %c0_8 = arith.constant 0 : index
    %4 = vector.load %arg6[%c0_7, %c0_8] : memref<32x1xf32, #tpu.memory_space<vmem>>, vector<32x1xf32>
    %c0_9 = arith.constant 0 : index
    %c0_10 = arith.constant 0 : index
    %5 = vector.load %arg7[%c0_9, %c0_10] : memref<1x1xf32, #tpu.memory_space<vmem>>, vector<1x1xf32>
    %c0_i32 = arith.constant 0 : i32
    %c256_i32 = arith.constant 256 : i32
    %6 = arith.muli %c0_i32, %c256_i32 : i32
    %7 = tpu.assume_multiple %6, 256 : i32
    %c0_11 = arith.constant 0 : index
    %8 = arith.index_cast %7 : i32 to index
    %9 = vector.load %arg1[%c0_11, %8] : memref<6x256xf32, #tpu.memory_space<vmem>>, vector<6x256xf32>
    %cst = arith.constant dense<0.000000e+00> : vector<64x256xf32>
    %10 = tpu.matmul %0, %9, %cst {dimension_numbers = #tpu.dot_dimension_numbers<[1], [0], [0], [1], [0, 0, 1, 1], [], []>} : vector<64x6xf32>, vector<6x256xf32>, vector<64x256xf32> -> vector<64x256xf32>
    %11 = vector.broadcast %1 : vector<64x1xf32> to vector<64x256xf32>
    %12 = arith.addf %10, %11 : vector<64x256xf32>
    %cst_12 = arith.constant 0.000000e+00 : f32
    %13 = vector.broadcast %cst_12 : f32 to vector<64x256xf32>
    %14 = arith.maximumf %12, %13 : vector<64x256xf32>
    %cst_13 = arith.constant dense<0.000000e+00> : vector<32x256xf32>
    %15 = tpu.matmul %2, %14, %cst_13 {dimension_numbers = #tpu.dot_dimension_numbers<[1], [0], [0], [1], [0, 0, 1, 1], [], []>} : vector<32x64xf32>, vector<64x256xf32>, vector<32x256xf32> -> vector<32x256xf32>
    %16 = vector.broadcast %3 : vector<32x1xf32> to vector<32x256xf32>
    %17 = arith.addf %15, %16 : vector<32x256xf32>
    %cst_14 = arith.constant 0.000000e+00 : f32
    %18 = vector.broadcast %cst_14 : f32 to vector<32x256xf32>
    %19 = arith.maximumf %17, %18 : vector<32x256xf32>
    %20 = vector.broadcast %4 : vector<32x1xf32> to vector<32x256xf32>
    %21 = arith.mulf %19, %20 : vector<32x256xf32>
    %cst_15 = arith.constant dense<0.000000e+00> : vector<256xf32>
    %22 = vector.multi_reduction <add>, %21, %cst_15 [0] : vector<32x256xf32> to vector<256xf32>
    %23 = vector.shape_cast %22 : vector<256xf32> to vector<1x256xf32>
    %24 = vector.broadcast %5 : vector<1x1xf32> to vector<1x256xf32>
    %25 = arith.addf %23, %24 : vector<1x256xf32>
    %cst_16 = arith.constant dense<0xFF800000> : vector<256xf32>
    %26 = vector.multi_reduction <maximumf>, %25, %cst_16 [0] : vector<1x256xf32> to vector<256xf32>
    %27 = vector.shape_cast %26 : vector<256xf32> to vector<1x256xf32>
    %28 = arith.subf %25, %27 : vector<1x256xf32>
    %29 = math.exp %28 : vector<1x256xf32>
    %cst_17 = arith.constant dense<0.000000e+00> : vector<256xf32>
    %30 = vector.multi_reduction <add>, %29, %cst_17 [0] : vector<1x256xf32> to vector<256xf32>
    %31 = vector.shape_cast %30 : vector<256xf32> to vector<1x256xf32>
    %32 = arith.divf %29, %31 : vector<1x256xf32>
    %c0_18 = arith.constant 0 : index
    %33 = arith.index_cast %7 : i32 to index
    %34 = vector.load %arg8[%c0_18, %33] : memref<1x256xf32, #tpu.memory_space<vmem>>, vector<1x256xf32>
    tpu.vector_store %arg8[%c0_18, %33], %32 {strides = array<i32>} : memref<1x256xf32, #tpu.memory_space<vmem>>, vector<1x256xf32>,
    %c1_i32 = arith.constant 1 : i32
    return
  }
  func.func @transform_0(%arg0: i32) -> (i32, i32) {
    %c0_i32 = arith.constant 0 : i32
    %c0_i32_0 = arith.constant 0 : i32
    return %c0_i32, %arg0 : i32, i32
  }
  func.func @transform_1(%arg0: i32) -> (i32, i32) {
    %c0_i32 = arith.constant 0 : i32
    %c0_i32_0 = arith.constant 0 : i32
    %c0_i32_1 = arith.constant 0 : i32
    return %c0_i32, %c0_i32_0 : i32, i32
  }
  func.func @transform_2(%arg0: i32) -> (i32, i32) {
    %c0_i32 = arith.constant 0 : i32
    %c0_i32_0 = arith.constant 0 : i32
    %c0_i32_1 = arith.constant 0 : i32
    return %c0_i32, %c0_i32_0 : i32, i32
  }
  func.func @transform_3(%arg0: i32) -> (i32, i32) {
    %c0_i32 = arith.constant 0 : i32
    %c0_i32_0 = arith.constant 0 : i32
    %c0_i32_1 = arith.constant 0 : i32
    return %c0_i32, %c0_i32_0 : i32, i32
  }
  func.func @transform_4(%arg0: i32) -> (i32, i32) {
    %c0_i32 = arith.constant 0 : i32
    %c0_i32_0 = arith.constant 0 : i32
    %c0_i32_1 = arith.constant 0 : i32
    return %c0_i32, %c0_i32_0 : i32, i32
  }
  func.func @transform_5(%arg0: i32) -> (i32, i32) {
    %c0_i32 = arith.constant 0 : i32
    %c0_i32_0 = arith.constant 0 : i32
    %c0_i32_1 = arith.constant 0 : i32
    return %c0_i32, %c0_i32_0 : i32, i32
  }
  func.func @transform_6(%arg0: i32) -> (i32, i32) {
    %c0_i32 = arith.constant 0 : i32
    %c0_i32_0 = arith.constant 0 : i32
    %c0_i32_1 = arith.constant 0 : i32
    return %c0_i32, %c0_i32_0 : i32, i32
  }
  func.func @transform_7(%arg0: i32) -> (i32, i32) {
    %c0_i32 = arith.constant 0 : i32
    %c0_i32_0 = arith.constant 0 : i32
    return %c0_i32, %arg0 : i32, i32
  }
}

</mosaic_0001>

<bundles_post_ra>
// kernel: tpu_custom_call.1
= control target key start
LH: loop header
LB: loop body
LE: loop exit
PB: predicated region body
PF: predicated region fallthrough
CT: control target
= control target key end

     0   :  { %s707_s0 = inlined_call_operand.vmem [shape: f32[6,256], index: 0, kind: input, shape index: {}]   ;;  %s708_s1 = inlined_call_operand.vmem [shape: f32[64,6], index: 1, kind: input, shape index: {}]   ;;  %s709_s2 = inlined_call_operand.vmem [shape: f32[64,1], index: 2, kind: input, shape index: {}]   ;;  %s710_s3 = inlined_call_operand.vmem [shape: f32[32,64], index: 3, kind: input, shape index: {}]   ;;  %s711_s4 = inlined_call_operand.vmem [shape: f32[32,1], index: 4, kind: input, shape index: {}]   ;;  %s712_s5 = inlined_call_operand.vmem [shape: f32[32,1], index: 5, kind: input, shape index: {}]   ;;  %s713_s6 = inlined_call_operand.<no memory space> [shape: f32[1,1], index: 6, kind: input, shape index: {}]   ;;  %s714_s7 = inlined_call_operand.hbm [shape: f32[1,256], index: 7, kind: output, shape index: {}]  }
   0x1   :  { %v12_v0 = vstv %s713_s6 }
   0x2   :  { %13 = vst [vmem:[#allocation2] sm:$0x1] %v12_v0 }
   0x3   :  { %v59_v1 = vld [vmem:[%s707_s0 + $0x8] sm:$0x3f]  ;;  %vm125_vm0 = vcmask 1045504   ;;  %v58_v2 = vld [vmem:[%s707_s0] sm:$0x3f]  ;;  %v547_v3 = vmov 0.0  }
   0x4   :  { %497 = vmatprep.subr.msk.mxu0 %vm125_vm0, %v59_v1  ;;  %196 = vmatprep.mubr.f32.mxu0 %v547_v3  ;;  %v29_v4 = vld [vmem:[%s708_s1] sm:$0xff]  ;;  %vm100_vm1 = vcmask 48128   ;;  %v548_v5 = vmov 0   ;;  %v42_v6 = vld [vmem:[%s709_s2 + $0x28] sm:$0xff]  ;;  %v44_v8 = vld [vmem:[%s709_s2 + $0x38] sm:$0xff] }
   0x5   :  { %498 = vmatpush1.msk.msra.mxu0 %vm125_vm0, %v58_v2  ;;  %516 = vset.pattern.permute.xlu1 %v548_v5  ;;  %v30_v7 = vld [vmem:[%s708_s1 + $0x8] sm:$0xff]  ;;  %v41_v9 = vld [vmem:[%s709_s2 + $0x20] sm:$0xff]  ;;  %v43_v10 = vld [vmem:[%s709_s2 + $0x30] sm:$0xff] }
   0x6   :  { %499 = vmatmul.mubr.msk.f32.vlgmr.msra.gmra.mxu0 %vm100_vm1, %v29_v4  ;;  %515 = vset.pattern.permute.xlu0 %v548_v5  ;;  %v31_v11 = vld [vmem:[%s708_s1 + $0x10] sm:$0xff] }
   0x7   :  { %202 = vmatprep.mubr.f32.mxu0 %v547_v3  ;;  %87 = vperm.xlu1 %516, %v42_v6   ;;  %v39_v12 = vld [vmem:[%s709_s2 + $0x10] sm:$0xff] }
   0x8   :  { %97 = vperm.xlu0 %515, %v44_v8   ;;  %358 = vmatprep.mubr.f32.mxu1 %v547_v3 }
   0xa   :  { %500 = vmatmul.mubr.msk.f32.gmra.mxu0 %vm100_vm1, %v30_v7 }
   0xb   :  { %208 = vmatprep.mubr.f32.mxu0 %v547_v3  ;;  %82 = vperm.xlu1 %516, %v41_v9  }
   0xc   :  { %92 = vperm.xlu0 %515, %v43_v10  }
   0xd   :  { %14 = vsyncpa [#allocation4], 0  ;;  %v40_v13 = vld [vmem:[%s709_s2 + $0x18] sm:$0xff]  ;;  %v37_v15 = vld [vmem:[%s709_s2] sm:$0xff]  ;;  %vm281_vm2 = vcmask 523264  }
   0xe   :  { %501 = vmatmul.mubr.msk.f32.gmra.mxu0 %vm100_vm1, %v31_v11  ;;  %v32_v14 = vld [vmem:[%s708_s1 + $0x18] sm:$0xff]  ;;  %v38_v16 = vld [vmem:[%s709_s2 + $0x8] sm:$0xff]  ;;  %v33_v17 = vld [vmem:[%s708_s1 + $0x20] sm:$0xff] }
   0xf   :  { %214 = vmatprep.mubr.f32.mxu0 %v547_v3  ;;  %72 = vperm.xlu1 %516, %v39_v12   ;;  %v50_v18 = vld [vmem:[%s711_s4 + $0x8] sm:$0xff]  ;;  %v49_v19 = vld [vmem:[%s711_s4] sm:$0xff]  ;;  %v52_v21 = vld [vmem:[%s711_s4 + $0x18] sm:$0xff] }
  0x10   :  { %77 = vperm.xlu0 %515, %v40_v13   ;;  %v34_v20 = vld [vmem:[%s708_s1 + $0x28] sm:$0xff]  ;;  %v51_v22 = vld [vmem:[%s711_s4 + $0x10] sm:$0xff]  ;;  %v53_v25 = vld [vmem:[%s712_s5] sm:$0xff] }
  0x11   :  { %v35_v23 = vld [vmem:[%s708_s1 + $0x30] sm:$0xff]  ;;  %v54_v24 = vld [vmem:[%s712_s5 + $0x8] sm:$0xff]  ;;  %v36_v26 = vld [vmem:[%s708_s1 + $0x38] sm:$0xff] }
  0x12   :  { %502 = vmatmul.mubr.msk.f32.gmra.mxu0 %vm100_vm1, %v32_v14  ;;  %v56_v27 = vld [vmem:[%s712_s5 + $0x18] sm:$0xff]  ;;  %v55_v28 = vld [vmem:[%s712_s5 + $0x10] sm:$0xff]  ;;  %v57_v29 = vld [vmem:[#allocation2] sm:$0x1] }
  0x13   :  { %220 = vmatprep.mubr.f32.mxu0 %v547_v3  ;;  %62 = vperm.xlu1 %516, %v37_v15  }
  0x14   :  { %67 = vperm.xlu0 %515, %v38_v16  }
  0x16   :  { %503 = vmatmul.mubr.msk.f32.gmra.mxu0 %vm100_vm1, %v33_v17 }
  0x17   :  { %226 = vmatprep.mubr.f32.mxu0 %v547_v3  ;;  %268 = vperm.xlu1 %516, %v50_v18  }
  0x18   :  { %263 = vperm.xlu0 %515, %v49_v19  }
  0x1a   :  { %504 = vmatmul.mubr.msk.f32.gmra.mxu0 %vm100_vm1, %v34_v20 }
  0x1b   :  { %232 = vmatprep.mubr.f32.mxu0 %v547_v3  ;;  %278 = vperm.xlu1 %516, %v52_v21  }
  0x1c   :  { %273 = vperm.xlu0 %515, %v51_v22  }
  0x1e   :  { %505 = vmatmul.mubr.msk.f32.gmra.mxu0 %vm100_vm1, %v35_v23  ;;  %v45_v23 = vld [vmem:[%s710_s3] sm:$0xff] }
  0x1f   :  { %238 = vmatprep.mubr.f32.mxu0 %v547_v3  ;;  %398 = vperm.xlu1 %516, %v54_v24   ;;  %v46_v24 = vld [vmem:[%s710_s3 + $0x8] sm:$0xff] }
  0x20   :  { %393 = vperm.xlu0 %515, %v53_v25   ;;  %v47_v25 = vld [vmem:[%s710_s3 + $0x10] sm:$0xff] }
  0x22   :  { %506 = vmatmul.mubr.msk.f32.gmra.mxu0 %vm100_vm1, %v36_v26  ;;  %v48_v26 = vld [vmem:[%s710_s3 + $0x18] sm:$0xff]  ;;  %s550_s3 = smov [#allocation3]  }
  0x23   :  { %408 = vperm.xlu1 %516, %v56_v27   ;;  %s489_s6 = sshll.u32 %s550_s3, 4  ;;  %s490_s6 = int_to_ptr.vmem [resolvable:$true] %s489_s6 }
  0x24   :  { %403 = vperm.xlu0 %515, %v55_v28   ;;  %s525_s9 = scalar_lea.vmem %s490_s6, 32  ;;  %p530_p1 = scmp.lt.s32.totalorder %s490_s6, %s490_s6 }
  0x25   :  { %p526_p0 = scmp.ne.s32.totalorder %s490_s6, %s525_s9  ;;  %p531_p2 = scmp.lt.s32.totalorder %s525_s9, %s525_s9 }
  0x27   :  { %p532_p3 = por %p531_p2, %p530_p1 }
  0x28   :  { %439 = vperm.xlu0 %515, %v57_v29  }
  0x29   :  { %p533_p4 = pnand %p532_p3, %p526_p0 }
  0x82   :  { %v88_v43 = vpop.permute.xlu1 %87 }
  0x83   :  { %v98_v41 = vpop.permute.xlu0 %97 }
  0x86   :  { %v83_v48 = vpop.permute.xlu1 %82 }
  0x87   :  { %v93_v46 = vpop.permute.xlu0 %92 }
  0x8a   :  { %v73_v59 = vpop.permute.xlu1 %72 }
  0x8b   :  { %v78_v54 = vpop.permute.xlu0 %77 }
  0x8e   :  { %v63_v10 = vpop.permute.xlu1 %62 }
  0x8f   :  { %v68_v5 = vpop.permute.xlu0 %67 }
  0x92   :  { %v269_v28 = vpop.permute.xlu1 %268 }
  0x93   :  { %v264_v27 = vpop.permute.xlu0 %263 }
  0x97   :  { %v274_v29 = vpop.permute.xlu0 %273 }
  0xc6   :  { %v198_v30 = vpop.f32.mrf.mxu0 }
  0xc7   :  { %v199_v17 = vadd.f32 %v198_v30, %v63_v10 }
  0xc8   :  { %v200_v31 = vpop.f32.mrf.mxu0 }
  0xc9   :  { %v201_v15 = vadd.f32 %v200_v31, %v63_v10  ;;  %v245_v22 = vmax.f32 %v199_v17, 0.0 }
  0xca   :  { %v204_v32 = vpop.f32.mrf.mxu0 }
  0xcb   :  { %v205_v13 = vadd.f32 %v204_v32, %v68_v5  ;;  %v246_v21 = vmax.f32 %v201_v15, 0.0  ;;  %v279_v32 = vpop.permute.xlu1 %278 }
  0xcc   :  { %v206_v33 = vpop.f32.mrf.mxu0 }
  0xcd   :  { %v207_v11 = vadd.f32 %v206_v33, %v68_v5  ;;  %v247_v20 = vmax.f32 %v205_v13, 0.0  ;;  %v442_v5 = vlaneseq }
  0xce   :  { %v210_v34 = vpop.f32.mrf.mxu0 }
  0xcf   :  { %v211_v8 = vadd.f32 %v210_v34, %v73_v59  ;;  %v248_v19 = vmax.f32 %v207_v11, 0.0  ;;  %v443_v11 = vshrl.u32 %v442_v5, 7  ;;  %vm480_vm3 = vcmp.lt.s32.totalorder %v442_v5, 256 }
  0xd0   :  { %v212_v35 = vpop.f32.mrf.mxu0 }
  0xd1   :  { %v213_v6 = vadd.f32 %v212_v35, %v73_v59  ;;  %v249_v18 = vmax.f32 %v211_v8, 0.0 }
  0xd2   :  { %v216_v36 = vpop.f32.mrf.mxu0 }
  0xd3   :  { %v217_v2 = vadd.f32 %v216_v36, %v78_v54  ;;  %v250_v16 = vmax.f32 %v213_v6, 0.0  ;;  %v394_v36 = vpop.permute.xlu0 %393 }
  0xd4   :  { %v218_v37 = vpop.f32.mrf.mxu0 }
  0xd5   :  { %v219_v0 = vadd.f32 %v218_v37, %v78_v54  ;;  %v251_v14 = vmax.f32 %v217_v2, 0.0 }
  0xd6   :  { %v222_v38 = vpop.f32.mrf.mxu0 }
  0xd7   :  { %v223_v62 = vadd.f32 %v222_v38, %v83_v48  ;;  %v252_v12 = vmax.f32 %v219_v0, 0.0 }
  0xd8   :  { %v224_v39 = vpop.f32.mrf.mxu0 }
  0xd9   :  { %v225_v60 = vadd.f32 %v224_v39, %v83_v48  ;;  %v253_v9 = vmax.f32 %v223_v62, 0.0 }
  0xda   :  { %v228_v40 = vpop.f32.mrf.mxu0 }
  0xdb   :  { %v229_v57 = vadd.f32 %v228_v40, %v88_v43  ;;  %v254_v7 = vmax.f32 %v225_v60, 0.0 }
  0xdc   :  { %v230_v42 = vpop.f32.mrf.mxu0 }
  0xdd   :  { %v231_v55 = vadd.f32 %v230_v42, %v88_v43  ;;  %v255_v4 = vmax.f32 %v229_v57, 0.0 }
  0xde   :  { %v234_v44 = vpop.f32.mrf.mxu0 }
  0xdf   :  { %v235_v53 = vadd.f32 %v234_v44, %v93_v46  ;;  %v256_v1 = vmax.f32 %v231_v55, 0.0  ;;  %v399_v44 = vpop.permute.xlu1 %398 }
  0xe0   :  { %v236_v45 = vpop.f32.mrf.mxu0 }
  0xe1   :  { %v237_v51 = vadd.f32 %v236_v45, %v93_v46  ;;  %v257_v63 = vmax.f32 %v235_v53, 0.0 }
  0xe2   :  { %v240_v47 = vpop.f32.mrf.mxu0 }
  0xe3   :  { %v241_v49 = vadd.f32 %v240_v47, %v98_v41  ;;  %v258_v61 = vmax.f32 %v237_v51, 0.0 }
  0xe4   :  { %v242_v50 = vpop.f32.mrf.mxu0 }
  0xe5   :  { %v243_v52 = vadd.f32 %v242_v50, %v98_v41  ;;  %v259_v58 = vmax.f32 %v241_v49, 0.0  ;;  %v404_v50 = vpop.permute.xlu0 %403 }
  0xe7   :  { %v260_v56 = vmax.f32 %v243_v52, 0.0 }
  0xe9   :  { %310 = vmatprep.subr.mxu1 %v260_v56 }
  0xea   :  { %311 = vmatpush1.msra.mxu1 %v259_v58 }
  0xeb   :  { %312 = vmatprep.subr.mxu1 %v258_v61 }
  0xec   :  { %313 = vmatpush1.msra.mxu1 %v257_v63  ;;  %v409_v63 = vpop.permute.xlu1 %408 }
  0xed   :  { %314 = vmatprep.subr.mxu1 %v256_v1 }
  0xee   :  { %315 = vmatpush1.msra.mxu1 %v255_v4 }
  0xef   :  { %316 = vmatprep.subr.mxu1 %v254_v7 }
  0xf0   :  { %317 = vmatpush1.msra.mxu1 %v253_v9 }
  0xf1   :  { %318 = vmatprep.subr.mxu1 %v252_v12 }
  0xf2   :  { %319 = vmatpush1.msra.mxu1 %v251_v14 }
  0xf3   :  { %320 = vmatprep.subr.mxu1 %v250_v16  ;;  %v444_v16 = vsub.s32 0, %v443_v11 }
  0xf4   :  { %321 = vmatpush1.msra.mxu1 %v249_v18 }
  0xf5   :  { %322 = vmatprep.subr.mxu1 %v248_v19  ;;  %v440_v19 = vpop.permute.xlu0 %439 }
  0xf6   :  { %323 = vmatpush1.msra.mxu1 %v247_v20 }
  0xf7   :  { %324 = vmatprep.subr.mxu1 %v246_v21 }
  0xf8   :  { %325 = vmatpush1.msra.mxu1 %v245_v22  ;;  %v445_v22 = vrot.slane %v440_v19, %v444_v16 }
  0xf9   :  { %507 = vmatmul.mubr.msk.f32.vlgmr.msra.gmra.mxu1 %vm281_vm2, %v45_v23 }
  0xfa   :  { %364 = vmatprep.mubr.f32.mxu1 %v547_v3 }
  0xfd   :  { %508 = vmatmul.mubr.msk.f32.gmra.mxu1 %vm281_vm2, %v46_v24 }
  0xfe   :  { %370 = vmatprep.mubr.f32.mxu1 %v547_v3 }
 0x101   :  { %509 = vmatmul.mubr.msk.f32.gmra.mxu1 %vm281_vm2, %v47_v25 }
 0x102   :  { %376 = vmatprep.mubr.f32.mxu1 %v547_v3 }
 0x105   :  { %510 = vmatmul.mubr.msk.f32.gmra.mxu1 %vm281_vm2, %v48_v26 }
 0x1b9   :  { %v360_v30 = vpop.f32.mrf.mxu1 }
 0x1ba   :  { %v361_v33 = vadd.f32 %v360_v30, %v264_v27 }
 0x1bb   :  { %v362_v31 = vpop.f32.mrf.mxu1 }
 0x1bc   :  { %v363_v37 = vadd.f32 %v362_v31, %v264_v27  ;;  %v383_v3 = vmax.f32 %v361_v33, 0.0 }
 0x1bd   :  { %v366_v34 = vpop.f32.mrf.mxu1 }
 0x1be   :  { %v367_v35 = vadd.f32 %v366_v34, %v269_v28  ;;  %v384_v45 = vmax.f32 %v363_v37, 0.0  ;;  %v411_v51 = vmul.f32 %v394_v36, %v383_v3  ;;  %v549_v34 = vmov 1966171168  }
 0x1bf   :  { %v368_v38 = vpop.f32.mrf.mxu1 }
 0x1c0   :  { %v385_v39 = vmax.f32 %v367_v35, 0.0  ;;  %v369_v40 = vadd.f32 %v368_v38, %v269_v28  ;;  %v412_v57 = vmul.f32 %v394_v36, %v384_v45  ;;  %v464_v35 = vunpack.c.l.s4 %v549_v34 }
 0x1c1   :  { %v372_v41 = vpop.f32.mrf.mxu1 }
 0x1c2   :  { %v386_v42 = vmax.f32 %v369_v40, 0.0  ;;  %v373_v43 = vadd.f32 %v372_v41, %v274_v29  ;;  %v413_v47 = vmul.f32 %v399_v44, %v385_v39  ;;  %v465_v36 = vunpack.c.0.s8 %v464_v35 }
 0x1c3   :  { %v374_v46 = vpop.f32.mrf.mxu1 }
 0x1c4   :  { %v387_v48 = vmax.f32 %v373_v43, 0.0  ;;  %v375_v49 = vadd.f32 %v374_v46, %v274_v29  ;;  %v414_v53 = vmul.f32 %v399_v44, %v386_v42  ;;  %v419_v59 = vadd.f32 %v413_v47, %v411_v51 }
 0x1c5   :  { %v378_v52 = vpop.f32.mrf.mxu1  ;;  %v468_v3 = vsub.s32 %v465_v36, %v443_v11 }
 0x1c6   :  { %v415_v54 = vmul.f32 %v404_v50, %v387_v48  ;;  %v388_v55 = vmax.f32 %v375_v49, 0.0  ;;  %v379_v56 = vadd.f32 %v378_v52, %v279_v32  ;;  %v428_v0 = vadd.f32 %v414_v53, %v412_v57 }
 0x1c7   :  { %v380_v58 = vpop.f32.mrf.mxu1 }
 0x1c8   :  { %v416_v60 = vmul.f32 %v404_v50, %v388_v55  ;;  %v389_v61 = vmax.f32 %v379_v56, 0.0  ;;  %v381_v62 = vadd.f32 %v380_v58, %v279_v32  ;;  %v420_v1 = vadd.f32 %v419_v59, %v415_v54 }
 0x1ca   :  { %v417_v2 = vmul.f32 %v409_v63, %v389_v61  ;;  %v390_v4 = vmax.f32 %v381_v62, 0.0  ;;  %v429_v6 = vadd.f32 %v428_v0, %v416_v60 }
 0x1cc   :  { %v421_v7 = vadd.f32 %v420_v1, %v417_v2  ;;  %v418_v8 = vmul.f32 %v409_v63, %v390_v4 }
 0x1ce   :  { %v422_v9 = vrot.slane %v421_v7, 4  ;;  %v430_v10 = vadd.f32 %v429_v6, %v418_v8 }
 0x1d0   :  { %v423_v12 = vadd.f32 %v422_v9, %v421_v7  ;;  %v431_v13 = vrot.slane %v430_v10, 4 }
 0x1d2   :  { %v424_v14 = vrot.slane %v423_v12, 2  ;;  %v432_v15 = vadd.f32 %v431_v13, %v430_v10 }
 0x1d4   :  { %v425_v17 = vadd.f32 %v424_v14, %v423_v12  ;;  %v433_v18 = vrot.slane %v432_v15, 2 }
 0x1d6   :  { %v426_v20 = vrot.slane %v425_v17, 1  ;;  %v434_v21 = vadd.f32 %v433_v18, %v432_v15 }
 0x1d8   :  { %v427_v23 = vadd.f32 %v426_v20, %v425_v17  ;;  %v435_v24 = vrot.slane %v434_v21, 1 }
 0x1da   :  { %v446_v25 = vadd.f32 %v445_v22, %v427_v23  ;;  %v436_v26 = vadd.f32 %v435_v24, %v434_v21 }
 0x1dc   :  { %v448_v27 = vsub.f32 %v446_v25, %v446_v25  ;;  %v447_v28 = vadd.f32 %v445_v22, %v436_v26 }
 0x1de   :  { %v450_v29 = vmul.f32 1.442695, %v448_v27  ;;  %v449_v30 = vsub.f32 %v447_v28, %v447_v28 }
 0x1e0   :  { %517 = vpow2.f32 %v450_v29  ;;  %v452_v31 = vmul.f32 1.442695, %v449_v30 }
 0x1e2   :  { %519 = vpow2.f32 %v452_v31 }
 0x1ed   :  { %v518_v32 = vpop.eup %517 }
 0x1ee   :  { %521 = vrcp.f32 %v518_v32 }
 0x1ef   :  { %v520_v33 = vpop.eup %519 }
 0x1f0   :  { %523 = vrcp.f32 %v520_v33 }
 0x1fb   :  { %v522_v37 = vpop.eup %521 }
 0x1fc   :  { %v457_v39 = vmul.f32 %v522_v37, %v518_v32 }
 0x1fd   :  { %v524_v38 = vpop.eup %523 }
 0x1fe   :  { %v459_v40 = vmul.f32 %v524_v38, %v520_v33 }
 0x200   :  { %v462_v41 = vcombine.low %v457_v39, %v459_v40 }
 0x202   :  { %v469_v42 = vrot.slane %v462_v41, %v468_v3 }
 0x204   :  { %v476_v43 = vrot.slane %v469_v42, %v468_v3 }
 0x206   :  { %482 = vst.msk [vmem:[#allocation3] sm:$0x3] %vm480_vm3, %v476_v43 }
 0x207   :  { %536 = shalt.err (!%p533_p4)
}
 0x208   :  { %492 = dma.vmem_to_hbm [thread:$0]  %s490_s6, 32, %s714_s7, [#allocation4]  }
 0x209   :  { %545 = dma.done.wait [#allocation4], 32  }
 0x20a   :  { %546 = vsyncadd [#allocation4], 4294967264 }
 0x20b   :  { %496 = vsyncpa [#allocation4], 1 }

</bundles_post_ra>
